<compile_context>
chip_gen: v7x
topology: tpu7x:2x2x1
jax: 0.10.0
libtpu: 0.0.40
codegen_flags: <defaults>
</compile_context>

<pallas_src>
from functools import partial

import numpy as np
import jax
import jax.numpy as jnp
from jax import lax
from jax.experimental import pallas as pl
from jax.experimental.pallas import tpu as pltpu


def _cutout_kernel(fx_ref, ty_ref, x_ref, o_ref, *, n_regions, rect_freq, rect_time):
    """fx_ref, ty_ref: SMEM int32 (B * n_regions,) rectangle starts (flattened).
    x_ref, o_ref: VMEM (block_b, F, tile_t) tiles."""
    ib = pl.program_id(0)          # batch-block index
    it = pl.program_id(1)          # time-block index
    block_b, F, tT = x_ref.shape
    t_lo = it * tT                 # global time offset of this tile

    # Separable index vectors (hoisted: built once per grid step).
    f_iota = lax.broadcasted_iota(jnp.int32, (F, 1), 0)        # (F, 1)
    t_iota = lax.broadcasted_iota(jnp.int32, (1, tT), 1) + t_lo  # (1, tT) global time idx

    def row_body(bb, carry):
        base = (ib * block_b + bb) * n_regions

        # Scalar early-out: does any rectangle of this row intersect
        # [t_lo, t_lo + tT)?  (The freq axis is never tiled, so it always
        # intersects.)  Pure SMEM scalar reads, no vector work.
        hit = jnp.bool_(False)
        for r in range(n_regions):                        # tiny static unroll
            t0 = ty_ref[base + r]
            hit = jnp.logical_or(
                hit, jnp.logical_and(t0 < t_lo + tT, t0 + rect_time > t_lo))

        @pl.when(hit)
        def _():
            row = x_ref[bb]                               # (F, tT)
            cut = None
            for r in range(n_regions):                    # tiny static unroll
                f0 = fx_ref[base + r]
                t0 = ty_ref[base + r]
                # unsigned-range trick: (idx - start) as u32 < extent
                #   <=>  start <= idx < start + extent
                f_in = (f_iota - f0).astype(jnp.uint32) < rect_freq   # (F, 1)
                t_in = (t_iota - t0).astype(jnp.uint32) < rect_time   # (1, tT)
                m = f_in & t_in                           # broadcast AND -> (F, tT)
                cut = m if cut is None else (cut | m)
            o_ref[bb] = jnp.where(cut, 0.0, row)          # scalar zero, no zeros tile

        @pl.when(jnp.logical_not(hit))
        def _():
            o_ref[bb] = x_ref[bb]                         # straight copy

        return carry

    lax.fori_loop(0, block_b, row_body, 0, unroll=True)


def _vmem_limit_bytes():
    """Generation-aware scoped-VMEM budget: 64 MiB on v5e/v6e (128 MiB phys),
    32 MiB on v7x (64 MiB phys) / unknown."""
    cap = 64 * 1024 * 1024
    try:
        info = pltpu.get_tpu_info()
        cap = int(getattr(info, "vmem_capacity_bytes", cap))
    except Exception:
        pass
    return 64 * 1024 * 1024 if cap >= 100 * 1024 * 1024 else 32 * 1024 * 1024


def _choose_tiles(B, F, T, itemsize, target_bytes):
    """Pick (block_b, tile_t): lane-dense 128-multiple time tile + batch
    packing against a byte budget, with >=2 grid steps when possible."""
    # Lane-dense candidates: 128-multiple divisors of T (or full T fallback).
    t_divs = [d for d in range(128, T + 1, 128) if T % d == 0]
    if not t_divs:
        t_divs = [T]

    # Largest time tile whose single-row (F, tile_t) slab fits the budget.
    tile_t = t_divs[0]
    for d in t_divs:
        if F * d * itemsize <= target_bytes:
            tile_t = d

    # Pack batch rows up to the byte budget (exact divisor of B, no ragged edge).
    block_b = max(1, min(B, target_bytes // max(F * tile_t * itemsize, 1)))
    while B % block_b:
        block_b -= 1

    # Guarantee >=2 grid steps along a parallel axis (v7x megacore + pipelining).
    if (B // block_b) * (T // tile_t) < 2:
        if B > 1:
            block_b = max(1, B // 2)
            while B % block_b:
                block_b -= 1
        else:
            smaller = [d for d in t_divs if d < tile_t]
            if smaller:
                tile_t = smaller[-1]
    return block_b, tile_t


def spec_cutout_regions(x, key, *, cutout_rect_regions=0,
                        cutout_rect_time=5, cutout_rect_freq=20):
    """JAX/Pallas equivalent of SpecCutoutRegions.forward (x: (B, F, T))."""
    B, F, T = x.shape
    if cutout_rect_regions == 0:
        return x, None, None

    kx, ky = jax.random.split(key)
    # int(random.uniform(0, dim - rect)) -> uniform float truncated to int.
    # Clamp the range to >= 0 in case the rectangle is larger than the axis
    # (behavioral difference vs. the PyTorch module, which would negative-index).
    max_f = float(max(F - cutout_rect_freq, 0))
    max_t = float(max(T - cutout_rect_time, 0))
    fx = jax.random.uniform(kx, (B, cutout_rect_regions),
                            minval=0.0, maxval=max_f).astype(jnp.int32)
    ty = jax.random.uniform(ky, (B, cutout_rect_regions),
                            minval=0.0, maxval=max_t).astype(jnp.int32)

    vmem_limit = _vmem_limit_bytes()
    # ~4 MiB blocks; 2(in)+2(out) pipelined buffers stay well inside the limit.
    target_bytes = min(4 * 1024 * 1024, vmem_limit // 8)
    itemsize = jnp.dtype(x.dtype).itemsize
    block_b, tile_t = _choose_tiles(B, F, T, itemsize, target_bytes)
    grid = (B // block_b, T // tile_t)

    kernel = partial(_cutout_kernel,
                     n_regions=cutout_rect_regions,
                     rect_freq=cutout_rect_freq,
                     rect_time=cutout_rect_time)

    out = pl.pallas_call(
        kernel,
        out_shape=jax.ShapeDtypeStruct((B, F, T), x.dtype),
        grid_spec=pltpu.PrefetchScalarGridSpec(
            num_scalar_prefetch=2,  # flattened fx, ty land in SMEM
            grid=grid,
            in_specs=[pl.BlockSpec((block_b, F, tile_t),
                                   lambda ib, it, fx_r, ty_r: (ib, 0, it))],
            out_specs=pl.BlockSpec((block_b, F, tile_t),
                                   lambda ib, it, fx_r, ty_r: (ib, 0, it)),
        ),
        compiler_params=pltpu.CompilerParams(
            dimension_semantics=("parallel", "parallel"),
            vmem_limit_bytes=vmem_limit),
    )(fx.reshape(-1), ty.reshape(-1), x)
    return out, fx, ty


def _reference(x, fx, ty, rect_freq, rect_time):
    x = np.array(x).copy()
    fx = np.array(fx)
    ty = np.array(ty)
    B = x.shape[0]
    for b in range(B):
        for r in range(fx.shape[1]):
            f0, t0 = int(fx[b, r]), int(ty[b, r])
            x[b, f0:f0 + rect_freq, t0:t0 + rect_time] = 0.0
    return x


if __name__ == "__main__":
    cfg = dict(cutout_rect_regions=2, cutout_rect_time=5, cutout_rect_freq=20)
    key = jax.random.PRNGKey(0)

    # Case 1: B=2 -> batch axis gets split for >=2 grid steps (megacore path).
    # Case 2: B=1 -> time axis gets split (exercises the per-tile early-out).
    for shape in [(2, 64, 256), (1, 64, 256)]:
        kdata, kmask, key = jax.random.split(key, 3)
        x = jax.random.normal(kdata, shape, dtype=jnp.float32)

        out, fx, ty = spec_cutout_regions(
            x, kmask,
            cutout_rect_regions=cfg["cutout_rect_regions"],
            cutout_rect_time=cfg["cutout_rect_time"],
            cutout_rect_freq=cfg["cutout_rect_freq"])
        out = jax.block_until_ready(out)

        ref = _reference(x, fx, ty, cfg["cutout_rect_freq"], cfg["cutout_rect_time"])
        np.testing.assert_allclose(np.array(out), ref, rtol=0, atol=0)

    print("KERNEL_OK")
</pallas_src>

<mosaic_0001>
module attributes {stable_mosaic.version = 11 : i64} {
  func.func @_cutout_kernel(%arg0: i32, %arg1: i32, %arg2: memref<4xi32, #tpu.memory_space<smem>>, %arg3: memref<4xi32, #tpu.memory_space<smem>>, %arg4: memref<1x64x256xf32, #tpu.memory_space<vmem>>, %arg5: memref<1x64x256xf32, #tpu.memory_space<vmem>>) attributes {dimension_semantics = [#tpu.dimension_semantics<parallel>, #tpu.dimension_semantics<parallel>], iteration_bounds = array<i64: 2, 1>, scalar_prefetch = 2 : i64, scratch_operands = 0 : i64, tpu.core_type = #tpu.core_type<tc>, window_params = [{transform_indices = @transform_0, window_bounds = array<i64: 1, 64, 256>}, {transform_indices = @transform_1, window_bounds = array<i64: 1, 64, 256>}]} {
    %c256_i32 = arith.constant 256 : i32
    %0 = arith.muli %arg1, %c256_i32 : i32
    %1 = tpu.iota {dimensions = array<i32: 0>} : vector<64x1xi32>
    %2 = tpu.iota {dimensions = array<i32: 1>} : vector<1x256xi32>
    %3 = vector.broadcast %0 : i32 to vector<1x256xi32>
    %4 = arith.addi %2, %3 : vector<1x256xi32>
    %c0_i32 = arith.constant 0 : i32
    %c1_i32 = arith.constant 1 : i32
    %5 = arith.muli %arg0, %c1_i32 : i32
    %6 = arith.addi %5, %c0_i32 : i32
    %c2_i32 = arith.constant 2 : i32
    %7 = arith.muli %6, %c2_i32 : i32
    %c0_i32_0 = arith.constant 0 : i32
    %8 = arith.addi %7, %c0_i32_0 : i32
    %9 = arith.index_cast %8 : i32 to index
    %10 = memref.load %arg3[%9] : memref<4xi32, #tpu.memory_space<smem>>
    %c256_i32_1 = arith.constant 256 : i32
    %11 = arith.addi %0, %c256_i32_1 : i32
    %12 = arith.cmpi slt, %10, %11 : i32
    %c5_i32 = arith.constant 5 : i32
    %13 = arith.addi %10, %c5_i32 : i32
    %14 = arith.cmpi sgt, %13, %0 : i32
    %15 = arith.andi %12, %14 : i1
    %false = arith.constant false
    %16 = arith.ori %false, %15 : i1
    %c1_i32_2 = arith.constant 1 : i32
    %17 = arith.addi %7, %c1_i32_2 : i32
    %18 = arith.index_cast %17 : i32 to index
    %19 = memref.load %arg3[%18] : memref<4xi32, #tpu.memory_space<smem>>
    %c256_i32_3 = arith.constant 256 : i32
    %20 = arith.addi %0, %c256_i32_3 : i32
    %21 = arith.cmpi slt, %19, %20 : i32
    %c5_i32_4 = arith.constant 5 : i32
    %22 = arith.addi %19, %c5_i32_4 : i32
    %23 = arith.cmpi sgt, %22, %0 : i32
    %24 = arith.andi %21, %23 : i1
    %25 = arith.ori %16, %24 : i1
    %26 = arith.extui %25 : i1 to i32
    %c0_i32_5 = arith.constant 0 : i32
    %27 = arith.cmpi ne, %26, %c0_i32_5 : i32
    scf.if %27 {
      %31 = arith.index_cast %c0_i32 : i32 to index
      %c0 = arith.constant 0 : index
      %c0_8 = arith.constant 0 : index
      %32 = vector.load %arg4[%31, %c0, %c0_8] : memref<1x64x256xf32, #tpu.memory_space<vmem>>, vector<1x64x256xf32>
      %33 = vector.shape_cast %32 : vector<1x64x256xf32> to vector<64x256xf32>
      %c0_i32_9 = arith.constant 0 : i32
      %34 = arith.addi %7, %c0_i32_9 : i32
      %35 = arith.index_cast %34 : i32 to index
      %36 = memref.load %arg2[%35] : memref<4xi32, #tpu.memory_space<smem>>
      %c0_i32_10 = arith.constant 0 : i32
      %37 = arith.addi %7, %c0_i32_10 : i32
      %38 = arith.index_cast %37 : i32 to index
      %39 = memref.load %arg3[%38] : memref<4xi32, #tpu.memory_space<smem>>
      %40 = vector.broadcast %36 : i32 to vector<64x1xi32>
      %41 = arith.subi %1, %40 : vector<64x1xi32>
      %c20_i32 = arith.constant 20 : i32
      %42 = vector.broadcast %c20_i32 : i32 to vector<64x1xi32>
      %43 = arith.cmpi ult, %41, %42 : vector<64x1xi32>
      %44 = vector.broadcast %39 : i32 to vector<1x256xi32>
      %45 = arith.subi %4, %44 : vector<1x256xi32>
      %c5_i32_11 = arith.constant 5 : i32
      %46 = vector.broadcast %c5_i32_11 : i32 to vector<1x256xi32>
      %47 = arith.cmpi ult, %45, %46 : vector<1x256xi32>
      %48 = vector.broadcast %43 : vector<64x1xi1> to vector<64x256xi1>
      %49 = vector.broadcast %47 : vector<1x256xi1> to vector<64x256xi1>
      %50 = arith.andi %48, %49 : vector<64x256xi1>
      %c1_i32_12 = arith.constant 1 : i32
      %51 = arith.addi %7, %c1_i32_12 : i32
      %52 = arith.index_cast %51 : i32 to index
      %53 = memref.load %arg2[%52] : memref<4xi32, #tpu.memory_space<smem>>
      %c1_i32_13 = arith.constant 1 : i32
      %54 = arith.addi %7, %c1_i32_13 : i32
      %55 = arith.index_cast %54 : i32 to index
      %56 = memref.load %arg3[%55] : memref<4xi32, #tpu.memory_space<smem>>
      %57 = vector.broadcast %53 : i32 to vector<64x1xi32>
      %58 = arith.subi %1, %57 : vector<64x1xi32>
      %c20_i32_14 = arith.constant 20 : i32
      %59 = vector.broadcast %c20_i32_14 : i32 to vector<64x1xi32>
      %60 = arith.cmpi ult, %58, %59 : vector<64x1xi32>
      %61 = vector.broadcast %56 : i32 to vector<1x256xi32>
      %62 = arith.subi %4, %61 : vector<1x256xi32>
      %c5_i32_15 = arith.constant 5 : i32
      %63 = vector.broadcast %c5_i32_15 : i32 to vector<1x256xi32>
      %64 = arith.cmpi ult, %62, %63 : vector<1x256xi32>
      %65 = vector.broadcast %60 : vector<64x1xi1> to vector<64x256xi1>
      %66 = vector.broadcast %64 : vector<1x256xi1> to vector<64x256xi1>
      %67 = arith.andi %65, %66 : vector<64x256xi1>
      %68 = arith.ori %50, %67 : vector<64x256xi1>
      %cst = arith.constant 0.000000e+00 : f32
      %69 = vector.broadcast %cst : f32 to vector<64x256xf32>
      %70 = arith.select %68, %69, %33 : vector<64x256xi1>, vector<64x256xf32>
      %71 = arith.index_cast %c0_i32 : i32 to index
      %c0_16 = arith.constant 0 : index
      %c0_17 = arith.constant 0 : index
      %72 = vector.load %arg5[%71, %c0_16, %c0_17] : memref<1x64x256xf32, #tpu.memory_space<vmem>>, vector<1x64x256xf32>
      %73 = vector.shape_cast %72 : vector<1x64x256xf32> to vector<64x256xf32>
      %74 = vector.shape_cast %70 : vector<64x256xf32> to vector<1x64x256xf32>
      tpu.vector_store %arg5[%71, %c0_16, %c0_17], %74 {strides = array<i32>} : memref<1x64x256xf32, #tpu.memory_space<vmem>>, vector<1x64x256xf32>,
    } else {
    }
    %true = arith.constant true
    %28 = arith.xori %25, %true : i1
    %29 = arith.extui %28 : i1 to i32
    %c0_i32_6 = arith.constant 0 : i32
    %30 = arith.cmpi ne, %29, %c0_i32_6 : i32
    scf.if %30 {
      %31 = arith.index_cast %c0_i32 : i32 to index
      %c0 = arith.constant 0 : index
      %c0_8 = arith.constant 0 : index
      %32 = vector.load %arg4[%31, %c0, %c0_8] : memref<1x64x256xf32, #tpu.memory_space<vmem>>, vector<1x64x256xf32>
      %33 = vector.shape_cast %32 : vector<1x64x256xf32> to vector<64x256xf32>
      %34 = arith.index_cast %c0_i32 : i32 to index
      %c0_9 = arith.constant 0 : index
      %c0_10 = arith.constant 0 : index
      %35 = vector.load %arg5[%34, %c0_9, %c0_10] : memref<1x64x256xf32, #tpu.memory_space<vmem>>, vector<1x64x256xf32>
      %36 = vector.shape_cast %35 : vector<1x64x256xf32> to vector<64x256xf32>
      %37 = vector.shape_cast %33 : vector<64x256xf32> to vector<1x64x256xf32>
      tpu.vector_store %arg5[%34, %c0_9, %c0_10], %37 {strides = array<i32>} : memref<1x64x256xf32, #tpu.memory_space<vmem>>, vector<1x64x256xf32>,
    } else {
    }
    %c1_i32_7 = arith.constant 1 : i32
    return
  }
  func.func @transform_0(%arg0: i32, %arg1: i32, %arg2: memref<4xi32, #tpu.memory_space<smem>>, %arg3: memref<4xi32, #tpu.memory_space<smem>>) -> (i32, i32, i32) {
    %c0_i32 = arith.constant 0 : i32
    %c0_i32_0 = arith.constant 0 : i32
    return %arg0, %c0_i32, %arg1 : i32, i32, i32
  }
  func.func @transform_1(%arg0: i32, %arg1: i32, %arg2: memref<4xi32, #tpu.memory_space<smem>>, %arg3: memref<4xi32, #tpu.memory_space<smem>>) -> (i32, i32, i32) {
    %c0_i32 = arith.constant 0 : i32
    %c0_i32_0 = arith.constant 0 : i32
    return %arg0, %c0_i32, %arg1 : i32, i32, i32
  }
}

</mosaic_0001>

<bundles_post_ra>
// kernel: tpu_custom_call.1
= control target key start
LH: loop header
LB: loop body
LE: loop exit
PB: predicated region body
PF: predicated region fallthrough
CT: control target
= control target key end

     0   :  { %s1262_s0 = inlined_call_operand.hbm [shape: s32[4], index: 0, kind: input, shape index: {}]   ;;  %s1263_s2 = inlined_call_operand.hbm [shape: f32[2,64,256], index: 2, kind: input, shape index: {}]   ;;  %s1264_s3 = inlined_call_operand.hbm [shape: f32[2,64,256], index: 3, kind: output, shape index: {}]   ;;  %s1265_s1 = inlined_call_operand.vmem [shape: s32[4], index: 1, kind: input, shape index: {}]  }
   0x1   :  { %s608_s14 = scalar_lea.hbm %s1262_s0, 16 }
   0x2   :  { %p609_p0 = scmp.ne.s32.totalorder %s1262_s0, %s608_s14  ;;  %p612_p1 = scmp.lt.u32.totalorder %s608_s14, %s1262_s0 }
   0x4   :  { %p614_p2 = pnand %p612_p1, %p609_p0 }
   0x6   :  { %617 = shalt.err (!%p614_p2)  }
   0x7   :  { %s746_s19 = smov [#allocation3]   ;;  %s10_s24 = sshll.u32 %s1265_s1, 4  ;;  %s11_s24 = int_to_ptr.vmem [resolvable:$true] %s10_s24 }
   0x8   :  { %9 = dma.hbm_to_smem %s1262_s0, 16, %s746_s19, [#allocation2] }
   0x9   :  { %s618_s25 = scalar_lea.vmem %s11_s24, 16  ;;  %p623_p4 = scmp.lt.s32.totalorder %s11_s24, %s11_s24 }
   0xa   :  { %p619_p3 = scmp.ne.s32.totalorder %s11_s24, %s618_s25  ;;  %p624_p5 = scmp.lt.s32.totalorder %s618_s25, %s618_s25 }
   0xc   :  { %p625_p6 = por %p624_p5, %p623_p4 }
   0xe   :  { %p626_p7 = pnand %p625_p6, %p619_p3 }
  0x10   :  { %629 = shalt.err (!%p626_p7)  }
  0x11   :  { %s747_s26 = smov [#allocation4]  }
  0x12   :  { %13 = dma.vmem_to_smem %s11_s24, 16, %s747_s26, [#allocation2] }
  0x13   :  { %712 = dma.done.wait [#allocation2], 32 }
  0x14   :  { %713 = vsyncadd [#allocation2], 4294967264 }
  0x15   :  { %15 = sfence }
  0x16   :  { %16 = vsyncpa [#allocation6], 0 }
  0x17   :  { %18 = vsyncpa [#allocation6 + $0x1], 0 }
  0x18   :  { %19 = vsyncpa [#allocation7], 0 }
  0x19   :  { %21 = vsyncpa [#allocation7 + $0x1], 0  ;;  %s789_s0 = smov 0   ;;  %s791_s1 = smov 0  }
  0x1a   :  { %s793_s27 = smov 0   ;;  %s795_s28 = smov 0  }
  0x1b   :  { %s797_s29 = smov 0   ;;  %s799_s30 = smov 0  }
  0x1c LB: > { %s522_s4 = sadd.s32 4294967295, %s744_s30   ;;  %s523_s5 = sadd.s32 4294967294, %s744_s30   ;;  %s744_s30 = sphi %s799_s30, %s27_s30   ;;  %s740_s29 = sphi %s797_s29, %s1305_s29   ;;  %s736_s28 = sphi %s795_s28, %s1304_s28   ;;  %s732_s27 = sphi %s793_s27, %s1303_s27   ;;  %s728_s1 = sphi %s791_s1, %s1302_s1   ;;  %s724_s0 = sphi %s789_s0, %s1301_s0  }
  0x1d   : > { %s39_s6 = sadd.s32 1, %s740_s29  ;;  %s48_s7 = sadd.s32 1, %s732_s27 }
  0x1e   : > { %p41_p8 = scmp.ge.s32.totalorder %s39_s6, 2  ;;  %p55_p9 = scmp.ne.s32.totalorder %s732_s27, %s728_s1 }
  0x1f   : > { %p56_p10 = scmp.eq.s32.totalorder %s744_s30, 0  ;;  %p61_p11 = scmp.ne.s32.totalorder %s728_s1, %s724_s0 }
  0x20   : > { %s1307_s6 = smov (%p41_p8, %s39_s6), 0  ;;  %p62_p13 = scmp.eq.s32.totalorder %s522_s4, 0 }
  0x21   : > { %p830_p12 = por %p56_p10, %p55_p9  ;;  %s43_s9 = ssub.s32 %s740_s29, %s1307_s6 }
  0x22   : > { %p87_p0 = scmp.eq.s32.totalorder %s522_s4, 1  ;;  %p46_p1 = scmp.eq.s32.totalorder %s43_s9, 0 }
  0x23   : > { %p836_p2 = por %p62_p13, %p61_p11  ;;  %p93_p4 = scmp.eq.s32.totalorder %s523_s5, 1 }
  0x24   : > { %p840_p3 = por %p87_p0, %p55_p9  ;;  %p552_p7 = scmp.lt.s32.totalorder %s744_s30, 2 }
  0x25   : > { %s845_s12 = scalar_select %p46_p1, %s732_s27, %s48_s7  }
  0x26   : > { %s1269_s11 = scalar_select %p840_p3, 1, 0 }
  0x27   : > { %p847_p5 = por %p93_p4, %p61_p11  ;;  %s113_s14 = sand.u32 1, %s732_s27  }
  0x28   : > { %s526_s15 = sshll.u32 %s113_s14, 7  ;;  %s538_s16 = sshll.u32 %s740_s29, 11 }
  0x29   : > { %s1270_s13 = scalar_select %p847_p5, 1, 0 }
  0x2a   : > { %s858_s19 = scalar_lea.hbm %s1263_s2, %s538_s16  ;;  %s117_s20 = scalar_lea.vmem [#allocation5], %s526_s15 }
  0x2b   : > { %s126_s21 = sshll.u32 %s117_s20, 4  ;;  %p864_p8 = pnand %p552_p7, %p830_p12  ;;  %s860_s21 = int_to_ptr.vmem [resolvable:$true] %s126_s21 }
  0x2c   : > { %s869_s23 = scalar_lea.sflag [#allocation6], %s113_s14  ;;  %s630_s24 = scalar_lea.hbm %s858_s19, 2048 }
  0x2d   : > { %p631_p10 = scmp.ne.s32.totalorder %s858_s19, %s630_s24  ;;  %p632_p11 = pneg %p864_p8 }
  0x2e   : > { %s635_s4 = scalar_lea.hbm %s1263_s2, 4096  ;;  %p636_p12 = scmp.lt.u32.totalorder %s858_s19, %s1263_s2 }
  0x2f   : > { %p633_p13 = pnand %p632_p11, %p631_p10  ;;  %p637_p1 = scmp.lt.u32.totalorder %s635_s4, %s630_s24 }
  0x30   : > { %p639_p7 = scmp.lt.u32.totalorder %s630_s24, %s858_s19 }
  0x31   : > { %p634_p0 = pneg %p633_p13  ;;  %p638_p4 = por %p637_p1, %p636_p12 }
  0x33   : > { %p640_p6 = por %p639_p7, %p638_p4 }
  0x35   : > { %p641_p9 = pnand %p640_p6, %p634_p0 }
  0x37   : > { %644 = shalt.err (!%p641_p9)
}
  0x38   : > { %s645_s8 = scalar_lea.vmem %s860_s21, 2048  ;;  %s748_s9 = smov [#allocation5]  }
  0x39   : > { %p646_p10 = scmp.ne.s32.totalorder %s860_s21, %s645_s8  ;;  %s650_s14 = sshll.u32 %s748_s9, 4  ;;  %s651_s14 = int_to_ptr.vmem [resolvable:$false] %s650_s14 }
  0x3a   : > { %s652_s15 = scalar_lea.vmem %s651_s14, 4096  ;;  %p653_p3 = scmp.lt.s32.totalorder %s860_s21, %s651_s14 }
  0x3b   : > { %p648_p13 = pnand %p646_p10, %p632_p11  ;;  %p654_p12 = scmp.lt.s32.totalorder %s652_s15, %s645_s8 }
  0x3d   : > { %p649_p5 = pneg %p648_p13  ;;  %p655_p1 = por %p654_p12, %p653_p3 }
  0x3f   : > { %p656_p4 = pnand %p655_p1, %p649_p5 }
  0x41   : > { %659 = shalt.err (!%p656_p4)
}
  0x42   : > { %s749_s16 = smov 256   ;;  %s750_s17 = smov 16  }
  0x43   : > { %547 = dma.hbm_to_vmem [thread:$0]  (!%p864_p8), %s858_s19, 2048, %s860_s21, %s869_s23, %s749_s16, %s749_s16, %s750_s17  }
  0x44   : > { %p134_p6 = scmp.lt.s32.totalorder %s744_s30, 3  ;;  %p1272_p9 = scmp.ge.s32.totalorder %s744_s30, 1 }
  0x46   : > { %p135_p11 = pnand %p1272_p9, %p134_p6 }
  0x47   : > { %s901_s18 = sand.u32 (!%p135_p11), 1, %s728_s1  }
  0x48   : > { %138 = sbr.rel (%p135_p11) target bundleno = 193 (0xc1), region = 24  ;;  %s530_s20 = sshll.u32 (!%p135_p11), %s901_s18, 7 }
  0x49   : > { %s141_s24 = scalar_lea.sflag (!%p135_p11), [#allocation6], %s901_s18  ;;  %s907_s25 = scalar_lea.vmem (!%p135_p11), [#allocation5], %s530_s20 }
  0x4f   : > { %715 = dma.done.wait (%p836_p2), %s141_s24, 2048  }
  0x50   : > { %717 = vsyncadd (%p836_p2), %s141_s24, 4294965248  ;;  %s532_s19 = sshll.u32 %s736_s28, 1  ;;  %v166_v0 = vlaneseq  ;;  %s932_s5 = scalar_lea.vmem [#allocation8], %s530_s20 }
  0x51   : > { %s182_s21 = sld [smem:[#allocation4 + %s532_s19]]  ;;  %s189_s22 = sadd.s32 1, %s532_s19 }
  0x52   : > { %s190_s23 = sld [smem:[#allocation4 + %s189_s22]]  ;;  %v167_v1 = vshrl.u32 %v166_v0, 7  ;;  %v176_v2 = vand.u32 127, %v166_v0 }
  0x54   : > { %v168_v3 = vadd.s32 8, %v167_v1  ;;  %v914_v4 = vadd.s32 16, %v167_v1  ;;  %v916_v5 = vadd.s32 24, %v167_v1  ;;  %v918_v6 = vadd.s32 32, %v167_v1 }
  0x55   : > { %v920_v7 = vadd.s32 40, %v167_v1  ;;  %v922_v8 = vadd.s32 48, %v167_v1  ;;  %v924_v9 = vadd.s32 56, %v167_v1  ;;  %v177_v10 = vadd.s32 128, %v176_v2 }
  0x57   : > { %p184_p2 = scmp.lt.s32.totalorder %s182_s21, 256  ;;  %s185_s10 = sadd.s32 5, %s182_s21 }
  0x58   : > { %p186_p3 = scmp.gt.s32.totalorder %s185_s10, 0  ;;  %p191_p5 = scmp.lt.s32.totalorder %s190_s23, 256 }
  0x59   : > { %s192_s26 = sadd.s32 5, %s190_s23 }
  0x5a   : > { %p187_p8 = pnand %p186_p3, %p184_p2  ;;  %p193_p0 = scmp.gt.s32.totalorder %s192_s26, 0 }
  0x5c   : > { %p188_p7 = pneg %p187_p8  ;;  %p194_p10 = pnand %p193_p0, %p191_p5 }
  0x5e   : > { %p195_p13 = pneg %p194_p10 }
  0x60   : > { %p926_p12 = por %p195_p13, %p188_p7 }
  0x61   : > { %s216_s7 = sld [smem:[#allocation3 + %s532_s19]] (%p926_p12)  ;;  %v200_v22 = vld [vmem:[%s907_s25] sm:$0xff] (%p926_p12)  ;;  %v201_v25 = vld [vmem:[%s907_s25 + $0x8] sm:$0xff] (%p926_p12)  ;;  %v202_v30 = vld [vmem:[%s907_s25 + $0x10] sm:$0xff] (%p926_p12) }
  0x62   : > { %199 = sbr.rel (!%p926_p12) target bundleno = 158 (0x9e), region = 32  ;;  %s217_s8 = sld [smem:[#allocation4 + %s532_s19]] (%p926_p12)  ;;  %v203_v33 = vld [vmem:[%s907_s25 + $0x18] sm:$0xff] (%p926_p12)  ;;  %v204_v38 = vld [vmem:[%s907_s25 + $0x20] sm:$0xff] (%p926_p12)  ;;  %v205_v41 = vld [vmem:[%s907_s25 + $0x28] sm:$0xff] (%p926_p12) }
  0x63   : > { %s276_s9 = sld [smem:[#allocation3 + %s189_s22]] (%p926_p12)  ;;  %v206_v46 = vld [vmem:[%s907_s25 + $0x30] sm:$0xff] (%p926_p12)  ;;  %v207_v49 = vld [vmem:[%s907_s25 + $0x38] sm:$0xff] (%p926_p12)  ;;  %v208_v54 = vld [vmem:[%s907_s25 + $0x40] sm:$0xff] (%p926_p12) }
  0x64   : > { %s277_s14 = sld [smem:[#allocation4 + %s189_s22]] (%p926_p12)  ;;  %v209_v57 = vld [vmem:[%s907_s25 + $0x48] sm:$0xff] (%p926_p12)  ;;  %v210_v62 = vld [vmem:[%s907_s25 + $0x50] sm:$0xff] (%p926_p12) }
  0x67   : > { %v936_v11 = vstv (%p926_p12), %s216_s7 }
  0x68   : > { %v235_v12 = vstv (%p926_p12), %s217_s8  ;;  %v219_v13 = vsub.s32 (%p926_p12), %v167_v1, %v936_v11  ;;  %v220_v21 = vsub.s32 (%p926_p12), %v168_v3, %v936_v11  ;;  %v221_v28 = vsub.s32 (%p926_p12), %v914_v4, %v936_v11 }
  0x69   : > { %v939_v14 = vsub.s32 %v176_v2, %v235_v12  ;;  %v941_v15 = vstv %s276_s9  ;;  %v946_v19 = vsub.s32 %v177_v10, %v235_v12  ;;  %v222_v36 = vsub.s32 %v916_v5, %v936_v11 }
  0x6a   : > { %v295_v16 = vstv %s277_s14  ;;  %v279_v17 = vsub.s32 %v167_v1, %v941_v15  ;;  %vm227_vm0 = vcmp.lt.u32.totalorder %v219_v13, 20  ;;  %v280_v23 = vsub.s32 %v168_v3, %v941_v15  ;;  %v211_v1 = vld [vmem:[%s907_s25 + $0x58] sm:$0xff] }
  0x6b   : > { %v944_v18 = vsub.s32 %v176_v2, %v295_v16  ;;  %v948_v20 = vsub.s32 %v177_v10, %v295_v16  ;;  %vm238_vm1 = vcmp.lt.u32.totalorder %v939_v14, 5  ;;  %vm239_vm5 = vcmp.lt.u32.totalorder %v946_v19, 5  ;;  %v213_v10 = vld [vmem:[%s907_s25 + $0x68] sm:$0xff]  ;;  %v215_v13 = vld [vmem:[%s907_s25 + $0x78] sm:$0xff] }
  0x6c   : > { %vm260_vm2 = vmand %vm227_vm0, %vm238_vm1  ;;  %vm287_vm3 = vcmp.lt.u32.totalorder %v279_v17, 20  ;;  %vm964_vm10 = vcmp.lt.u32.totalorder %v220_v21, 20  ;;  %vm971_vm12 = vcmp.lt.u32.totalorder %v280_v23, 20  ;;  %v281_v31 = vsub.s32 %v914_v4, %v941_v15 }
  0x6d   : > { %vm298_vm4 = vcmp.lt.u32.totalorder %v944_v18, 5  ;;  %vm299_vm7 = vcmp.lt.u32.totalorder %v948_v20, 5  ;;  %vm261_vm9 = vmand %vm227_vm0, %vm239_vm5  ;;  %v282_v39 = vsub.s32 %v916_v5, %v941_v15  ;;  %v223_v44 = vsub.s32 %v918_v6, %v936_v11 }
  0x6e   : > { %vm320_vm6 = vmand %vm287_vm3, %vm298_vm4  ;;  %v283_v47 = vsub.s32 %v918_v6, %v941_v15  ;;  %v224_v52 = vsub.s32 %v920_v7, %v936_v11  ;;  %v284_v55 = vsub.s32 %v920_v7, %v941_v15  ;;  %v225_v60 = vsub.s32 %v922_v8, %v936_v11  ;;  %v212_v6 = vld [vmem:[%s907_s25 + $0x60] sm:$0xff] }
  0x6f   : > { %vm336_vm8 = vmor %vm260_vm2, %vm320_vm6  ;;  %v285_v63 = vsub.s32 %v922_v8, %v941_v15  ;;  %v226_v4 = vsub.s32 %v924_v9, %v936_v11  ;;  %v286_v7 = vsub.s32 %v924_v9, %v941_v15  ;;  %v214_v11 = vld [vmem:[%s907_s25 + $0x70] sm:$0xff] }
  0x70   : > { %v352_v24 = vsel %vm336_vm8, 0.0, %v200_v22  ;;  %vm321_vm11 = vmand %vm287_vm3, %vm299_vm7  ;;  %vm994_vm3 = vcmp.lt.u32.totalorder %v221_v28, 20  ;;  %vm1003_vm8 = vcmp.lt.u32.totalorder %v281_v31, 20 }
  0x71   : > { %368 = vst [vmem:[%s932_s5] sm:$0xff] %v352_v24  ;;  %vm337_vm13 = vmor %vm261_vm9, %vm321_vm11 }
  0x72   : > { %v353_v29 = vsel %vm337_vm13, 0.0, %v201_v25  ;;  %vm262_vm14 = vmand %vm964_vm10, %vm238_vm1 }
  0x73   : > { %369 = vst [vmem:[%s932_s5 + $0x8] sm:$0xff] %v353_v29  ;;  %vm322_vm15 = vmand %vm971_vm12, %vm298_vm4 }
  0x74   : > { %vm338_vm0 = vmor %vm262_vm14, %vm322_vm15  ;;  %vm1026_vm14 = vcmp.lt.u32.totalorder %v222_v36, 20 }
  0x75   : > { %v354_v32 = vsel %vm338_vm0, 0.0, %v202_v30  ;;  %vm263_vm2 = vmand %vm964_vm10, %vm239_vm5  ;;  %vm1035_vm0 = vcmp.lt.u32.totalorder %v282_v39, 20 }
  0x76   : > { %370 = vst [vmem:[%s932_s5 + $0x10] sm:$0xff] %v354_v32  ;;  %vm323_vm6 = vmand %vm971_vm12, %vm299_vm7 }
  0x77   : > { %vm339_vm9 = vmor %vm263_vm2, %vm323_vm6 }
  0x78   : > { %v355_v37 = vsel %vm339_vm9, 0.0, %v203_v33  ;;  %vm264_vm10 = vmand %vm994_vm3, %vm238_vm1 }
  0x79   : > { %371 = vst [vmem:[%s932_s5 + $0x18] sm:$0xff] %v355_v37  ;;  %vm324_vm11 = vmand %vm1003_vm8, %vm298_vm4 }
  0x7a   : > { %vm340_vm12 = vmor %vm264_vm10, %vm324_vm11  ;;  %vm1058_vm10 = vcmp.lt.u32.totalorder %v223_v44, 20 }
  0x7b   : > { %v356_v40 = vsel %vm340_vm12, 0.0, %v204_v38  ;;  %vm265_vm13 = vmand %vm994_vm3, %vm239_vm5  ;;  %vm1067_vm12 = vcmp.lt.u32.totalorder %v283_v47, 20 }
  0x7c   : > { %372 = vst [vmem:[%s932_s5 + $0x20] sm:$0xff] %v356_v40  ;;  %vm325_vm15 = vmand %vm1003_vm8, %vm299_vm7 }
  0x7d   : > { %vm341_vm2 = vmor %vm265_vm13, %vm325_vm15 }
  0x7e   : > { %v357_v45 = vsel %vm341_vm2, 0.0, %v205_v41  ;;  %vm266_vm3 = vmand %vm1026_vm14, %vm238_vm1 }
  0x7f   : > { %373 = vst [vmem:[%s932_s5 + $0x28] sm:$0xff] %v357_v45  ;;  %vm326_vm6 = vmand %vm1035_vm0, %vm298_vm4 }
  0x80   : > { %vm342_vm8 = vmor %vm266_vm3, %vm326_vm6  ;;  %vm1090_vm3 = vcmp.lt.u32.totalorder %v224_v52, 20 }
  0x81   : > { %v358_v48 = vsel %vm342_vm8, 0.0, %v206_v46  ;;  %vm267_vm9 = vmand %vm1026_vm14, %vm239_vm5  ;;  %vm1099_vm8 = vcmp.lt.u32.totalorder %v284_v55, 20 }
  0x82   : > { %374 = vst [vmem:[%s932_s5 + $0x30] sm:$0xff] %v358_v48  ;;  %vm327_vm11 = vmand %vm1035_vm0, %vm299_vm7 }
  0x83   : > { %vm343_vm13 = vmor %vm267_vm9, %vm327_vm11 }
  0x84   : > { %v359_v53 = vsel %vm343_vm13, 0.0, %v207_v49  ;;  %vm268_vm14 = vmand %vm1058_vm10, %vm238_vm1 }
  0x85   : > { %375 = vst [vmem:[%s932_s5 + $0x38] sm:$0xff] %v359_v53  ;;  %vm328_vm15 = vmand %vm1067_vm12, %vm298_vm4 }
  0x86   : > { %vm344_vm0 = vmor %vm268_vm14, %vm328_vm15  ;;  %vm1122_vm14 = vcmp.lt.u32.totalorder %v225_v60, 20 }
  0x87   : > { %v360_v56 = vsel %vm344_vm0, 0.0, %v208_v54  ;;  %vm269_vm2 = vmand %vm1058_vm10, %vm239_vm5  ;;  %vm1131_vm0 = vcmp.lt.u32.totalorder %v285_v63, 20 }
  0x88   : > { %376 = vst [vmem:[%s932_s5 + $0x40] sm:$0xff] %v360_v56  ;;  %vm329_vm6 = vmand %vm1067_vm12, %vm299_vm7 }
  0x89   : > { %vm345_vm9 = vmor %vm269_vm2, %vm329_vm6 }
  0x8a   : > { %v361_v61 = vsel %vm345_vm9, 0.0, %v209_v57  ;;  %vm270_vm10 = vmand %vm1090_vm3, %vm238_vm1 }
  0x8b   : > { %377 = vst [vmem:[%s932_s5 + $0x48] sm:$0xff] %v361_v61  ;;  %vm330_vm11 = vmand %vm1099_vm8, %vm298_vm4 }
  0x8c   : > { %vm346_vm12 = vmor %vm270_vm10, %vm330_vm11  ;;  %vm234_vm10 = vcmp.lt.u32.totalorder %v226_v4, 20 }
  0x8d   : > { %v362_v0 = vsel %vm346_vm12, 0.0, %v210_v62  ;;  %vm271_vm13 = vmand %vm1090_vm3, %vm239_vm5  ;;  %vm294_vm12 = vcmp.lt.u32.totalorder %v286_v7, 20 }
  0x8e   : > { %378 = vst [vmem:[%s932_s5 + $0x50] sm:$0xff] %v362_v0  ;;  %vm331_vm15 = vmand %vm1099_vm8, %vm299_vm7 }
  0x8f   : > { %vm347_vm2 = vmor %vm271_vm13, %vm331_vm15 }
  0x90   : > { %v363_v5 = vsel %vm347_vm2, 0.0, %v211_v1  ;;  %vm272_vm3 = vmand %vm1122_vm14, %vm238_vm1 }
  0x91   : > { %379 = vst [vmem:[%s932_s5 + $0x58] sm:$0xff] %v363_v5  ;;  %vm332_vm6 = vmand %vm1131_vm0, %vm298_vm4 }
  0x92   : > { %vm348_vm8 = vmor %vm272_vm3, %vm332_vm6 }
  0x93   : > { %v364_v8 = vsel %vm348_vm8, 0.0, %v212_v6  ;;  %vm273_vm9 = vmand %vm1122_vm14, %vm239_vm5 }
  0x94   : > { %380 = vst [vmem:[%s932_s5 + $0x60] sm:$0xff] %v364_v8  ;;  %vm333_vm11 = vmand %vm1131_vm0, %vm299_vm7 }
  0x95   : > { %vm349_vm13 = vmor %vm273_vm9, %vm333_vm11 }
  0x96   : > { %v365_v9 = vsel %vm349_vm13, 0.0, %v213_v10  ;;  %vm274_vm15 = vmand %vm234_vm10, %vm238_vm1 }
  0x97   : > { %381 = vst [vmem:[%s932_s5 + $0x68] sm:$0xff] %v365_v9  ;;  %vm334_vm2 = vmand %vm294_vm12, %vm298_vm4 }
  0x98   : > { %vm350_vm14 = vmor %vm274_vm15, %vm334_vm2 }
  0x99   : > { %v366_v12 = vsel %vm350_vm14, 0.0, %v214_v11  ;;  %vm275_vm3 = vmand %vm234_vm10, %vm239_vm5 }
  0x9a   : > { %382 = vst [vmem:[%s932_s5 + $0x70] sm:$0xff] %v366_v12  ;;  %vm335_vm0 = vmand %vm294_vm12, %vm299_vm7 }
  0x9b   : > { %vm351_vm6 = vmor %vm275_vm3, %vm335_vm0 }
  0x9c   : > { %v367_v15 = vsel %vm351_vm6, 0.0, %v215_v13 }
  0x9d   : > { %383 = vst [vmem:[%s932_s5 + $0x78] sm:$0xff] %v367_v15 }
  0x9e PF: > { %386 = sbr.rel (%p926_p12) target bundleno = 167 (0xa7), region = 36  ;;  %v387_v14 = vld [vmem:[%s907_s25] sm:$0xff] (!%p926_p12)  ;;  %v388_v16 = vld [vmem:[%s907_s25 + $0x8] sm:$0xff] (!%p926_p12)  ;;  %v389_v17 = vld [vmem:[%s907_s25 + $0x10] sm:$0xff] (!%p926_p12) }
  0x9f   : > { %403 = vst [vmem:[%s932_s5] sm:$0xff] (!%p926_p12), %v387_v14  ;;  %404 = vst [vmem:[%s932_s5 + $0x8] sm:$0xff] (!%p926_p12), %v388_v16  ;;  %v390_v18 = vld [vmem:[%s907_s25 + $0x18] sm:$0xff] (!%p926_p12)  ;;  %v391_v19 = vld [vmem:[%s907_s25 + $0x20] sm:$0xff] (!%p926_p12) }
  0xa0   : > { %405 = vst [vmem:[%s932_s5 + $0x10] sm:$0xff] (!%p926_p12), %v389_v17  ;;  %v392_v20 = vld [vmem:[%s907_s25 + $0x28] sm:$0xff] (!%p926_p12)  ;;  %406 = vst [vmem:[%s932_s5 + $0x18] sm:$0xff] (!%p926_p12), %v390_v18  ;;  %v393_v21 = vld [vmem:[%s907_s25 + $0x30] sm:$0xff] (!%p926_p12) }
  0xa1   : > { %407 = vst [vmem:[%s932_s5 + $0x20] sm:$0xff] (!%p926_p12), %v391_v19  ;;  %408 = vst [vmem:[%s932_s5 + $0x28] sm:$0xff] (!%p926_p12), %v392_v20  ;;  %v394_v22 = vld [vmem:[%s907_s25 + $0x38] sm:$0xff] (!%p926_p12)  ;;  %v395_v23 = vld [vmem:[%s907_s25 + $0x40] sm:$0xff] (!%p926_p12) }
  0xa2   : > { %409 = vst [vmem:[%s932_s5 + $0x30] sm:$0xff] (!%p926_p12), %v393_v21  ;;  %410 = vst [vmem:[%s932_s5 + $0x38] sm:$0xff] (!%p926_p12), %v394_v22  ;;  %v396_v24 = vld [vmem:[%s907_s25 + $0x48] sm:$0xff] (!%p926_p12)  ;;  %v397_v25 = vld [vmem:[%s907_s25 + $0x50] sm:$0xff] (!%p926_p12) }
  0xa3   : > { %411 = vst [vmem:[%s932_s5 + $0x40] sm:$0xff] (!%p926_p12), %v395_v23  ;;  %v398_v26 = vld [vmem:[%s907_s25 + $0x58] sm:$0xff] (!%p926_p12)  ;;  %412 = vst [vmem:[%s932_s5 + $0x48] sm:$0xff] (!%p926_p12), %v396_v24  ;;  %v399_v27 = vld [vmem:[%s907_s25 + $0x60] sm:$0xff] (!%p926_p12) }
  0xa4   : > { %413 = vst [vmem:[%s932_s5 + $0x50] sm:$0xff] (!%p926_p12), %v397_v25  ;;  %414 = vst [vmem:[%s932_s5 + $0x58] sm:$0xff] (!%p926_p12), %v398_v26  ;;  %v400_v28 = vld [vmem:[%s907_s25 + $0x68] sm:$0xff] (!%p926_p12)  ;;  %v401_v29 = vld [vmem:[%s907_s25 + $0x70] sm:$0xff] (!%p926_p12) }
  0xa5   : > { %415 = vst [vmem:[%s932_s5 + $0x60] sm:$0xff] %v399_v27  ;;  %416 = vst [vmem:[%s932_s5 + $0x68] sm:$0xff] %v400_v28  ;;  %v402_v30 = vld [vmem:[%s907_s25 + $0x78] sm:$0xff] }
  0xa6   : > { %417 = vst [vmem:[%s932_s5 + $0x70] sm:$0xff] %v401_v29  ;;  %418 = vst [vmem:[%s932_s5 + $0x78] sm:$0xff] %v402_v30 }
  0xa7 PF: > { %s539_s15 = sshll.u32 %s736_s28, 11  ;;  %s435_s24 = sshll.u32 %s932_s5, 4  ;;  %s1213_s24 = int_to_ptr.vmem [resolvable:$true] %s435_s24 }
  0xa8   : > { %s1210_s20 = scalar_lea.hbm %s1264_s3, %s539_s15  ;;  %s420_s19 = scalar_lea.sflag [#allocation7], %s901_s18 }
  0xa9   : > { %s660_s25 = scalar_lea.vmem %s1213_s24, 2048  ;;  %p1298_p4 = scmp.ne.s32.totalorder %s1269_s11, 0 }
  0xaa   : > { %p661_p1 = scmp.ne.s32.totalorder %s1213_s24, %s660_s25  ;;  %s751_s21 = smov [#allocation8]  }
  0xab   : > { %s664_s22 = sshll.u32 %s751_s21, 4  ;;  %s665_s22 = int_to_ptr.vmem [resolvable:$false] %s664_s22 }
  0xac   : > { %p662_p6 = pnand %p661_p1, %p1298_p4  ;;  %s666_s28 = scalar_lea.vmem %s665_s22, 4096 }
  0xad   : > { %p667_p11 = scmp.lt.s32.totalorder %s1213_s24, %s665_s22  ;;  %p668_p2 = scmp.lt.s32.totalorder %s666_s28, %s660_s25 }
  0xae   : > { %p663_p9 = pneg %p662_p6 }
  0xaf   : > { %p669_p3 = por %p668_p2, %p667_p11 }
  0xb1   : > { %p670_p5 = pnand %p669_p3, %p663_p9 }
  0xb3   : > { %673 = shalt.err (!%p670_p5)
}
  0xb4   : > { %s674_s23 = scalar_lea.hbm %s1210_s20, 2048  ;;  %s678_s4 = scalar_lea.hbm %s1264_s3, 4096 }
  0xb5   : > { %p675_p8 = scmp.ne.s32.totalorder %s1210_s20, %s674_s23  ;;  %p679_p10 = scmp.lt.u32.totalorder %s1210_s20, %s1264_s3 }
  0xb6   : > { %p680_p13 = scmp.lt.u32.totalorder %s678_s4, %s674_s23  ;;  %p682_p1 = scmp.lt.u32.totalorder %s674_s23, %s1210_s20 }
  0xb7   : > { %p676_p0 = pnand %p675_p8, %p1298_p4 }
  0xb8   : > { %p681_p12 = por %p680_p13, %p679_p10 }
  0xb9   : > { %p677_p7 = pneg %p676_p0 }
  0xba   : > { %p683_p6 = por %p682_p1, %p681_p12 }
  0xbc   : > { %p684_p9 = pnand %p683_p6, %p677_p7 }
  0xbe   : > { %687 = shalt.err (!%p684_p9)
}
  0xbf   : > { %s752_s8 = smov 256   ;;  %s753_s9 = smov 16  }
  0xc0   : > { %542 = dma.vmem_to_hbm [thread:$0]  (%p1298_p4), %s1213_s24, 2048, %s1210_s20, %s420_s19, %s752_s8, %s752_s8, %s753_s9  }
  0xc1 PF: > { %s450_s14 = sand.u32 1, %s724_s0   ;;  %p1299_p11 = scmp.ne.s32.totalorder %s1270_s13, 0 }
  0xc2   : > { %p1300_p2 = scmp.ge.s32.totalorder %s744_s30, 2  ;;  %s451_s15 = scalar_lea.sflag [#allocation7], %s450_s14 }
  0xc4   : > { %p549_p3 = pnand %p1300_p2, %p1299_p11 }
  0xc6   : > { %719 = dma.done.wait (!%p549_p3), %s451_s15, 2048  }
  0xc7   : > { %721 = vsyncadd (!%p549_p3), %s451_s15, 4294965248  ;;  %s27_s30 = sadd.s32 1, %s744_s30   ;;  %s1301_s0 = smov %s728_s1 }
  0xc8   : > { %p24_p5 = scmp.ge.s32.totalorder %s27_s30, 4   ;;  %s1302_s1 = smov %s732_s27 }
  0xc9   : > { %s1303_s27 = smov %s845_s12  ;;  %s1304_s28 = smov %s740_s29 }
  0xca   : > { %s1305_s29 = smov %s1307_s6  ;;  %26 = sbr.rel (!%p24_p5) target bundleno = 28 (0x1c), region = 77 }
  0xd1   :  { %456 = vsyncpa [#allocation6], 1 }
  0xd2   :  { %458 = vsyncpa [#allocation6 + $0x1], 1 }
  0xd3   :  { %459 = vsyncpa [#allocation7], 1 }
  0xd4   :  { %461 = vsyncpa [#allocation7 + $0x1], 1 }

</bundles_post_ra>
